<compile_context>
chip_gen: v5e
topology: v5e:2x2
jax: 0.10.0
libtpu: 0.0.40
codegen_flags: <defaults>
</compile_context>

<pallas_src>
import functools

import numpy as np
import jax
import jax.numpy as jnp
from jax.experimental import pallas as pl
from jax.experimental.pallas import tpu as pltpu


# ----------------------------------------------------------------------------
# Deterministic parameter construction (mirrors TTC.__init__)
# ----------------------------------------------------------------------------
def gaussian2D2(shape, sigma=(1, 1), rho=0):
    if not isinstance(sigma, tuple):
        sigma = (sigma, sigma)
    sigma_x, sigma_y = sigma
    m, n = [(ss - 1.0) / 2.0 for ss in shape]
    y, x = np.ogrid[-m:m + 1, -n:n + 1]
    energy = (x * x / (sigma_x * sigma_x)
              - 2 * rho * x * y / (sigma_x * sigma_y)
              + y * y / (sigma_y * sigma_y))
    h = np.exp(-energy / (2 * (1 - rho * rho)))
    h[h < np.finfo(h.dtype).eps * h.max()] = 0
    return h / h.sum()


def _separable_taps(k5x5):
    """rho=0 Gaussian is rank-1: k = kv ⊗ kh exactly (kv/kh = row/col sums)."""
    k = np.asarray(k5x5, np.float64)
    kv = k.sum(axis=1)
    kh = k.sum(axis=0)
    return kv, kh


def _pick_tile(n, target, quantum):
    """Largest tile <= target that divides n and is a multiple of `quantum`;
    falls back to the full extent (always a legal TPU block)."""
    if n <= target:
        return n
    t = (target // quantum) * quantum
    while t >= quantum:
        if n % t == 0:
            return t
        t -= quantum
    return n


# ----------------------------------------------------------------------------
# Kernel 1: lane-dense elementwise normalization (used for image1)
# ----------------------------------------------------------------------------
def _norm_kernel(x_ref, o_ref):
    # 2 * (x / 255) - 1
    o_ref[...] = 2.0 * (x_ref[...] * (1.0 / 255.0)) - 1.0


def normalize_image(x):
    """x float32 in [0, 255] -> normalized to [-1, 1], lane-dense tiling."""
    shape = x.shape
    total = int(np.prod(shape))
    lanes = next((c for c in (1024, 512, 256, 128) if total % c == 0), None)
    if lanes is None:
        # TODO(synk): odd element counts fall back to a single whole-array block.
        return pl.pallas_call(
            _norm_kernel,
            out_shape=jax.ShapeDtypeStruct(shape, x.dtype),
        )(x)
    rows = total // lanes
    tr = _pick_tile(rows, 1024, 8)
    y = pl.pallas_call(
        _norm_kernel,
        out_shape=jax.ShapeDtypeStruct((rows, lanes), x.dtype),
        grid=(rows // tr,),
        in_specs=[pl.BlockSpec((tr, lanes), lambda i: (i, 0))],
        out_specs=pl.BlockSpec((tr, lanes), lambda i: (i, 0)),
        compiler_params=pltpu.CompilerParams(dimension_semantics=("parallel",)),
    )(x.reshape(rows, lanes))
    return y.reshape(shape)


# ----------------------------------------------------------------------------
# Kernel 2: fused normalize + two separable depthwise 5x5 Gaussian blurs
# ----------------------------------------------------------------------------
def _fused_norm_blur_kernel(x_ref, norm_ref, o2_ref, o4_ref, padv, padh,
                            *, wv2, wh2, wv4, wh4):
    # x_ref: (C, H, W) raw image plane for one batch element.
    C, H, W = x_ref.shape

    # Zero the halo scratch once; only interiors are rewritten per grid step.
    @pl.when(pl.program_id(0) == 0)
    def _():
        padv[...] = jnp.zeros_like(padv)
        padh[...] = jnp.zeros_like(padh)

    # Fused normalization: 2 * (x / 255) - 1
    n = 2.0 * (x_ref[...] * (1.0 / 255.0)) - 1.0
    norm_ref[...] = n.astype(norm_ref.dtype)

    # Vertical halo (zero padding of 2 rows top/bottom) lives in VMEM scratch.
    padv[:, 2:2 + H, :] = n.astype(jnp.float32)

    # Two separable blurs of the same normalized input (weightt2 / weightt4).
    # PyTorch conv2d is cross-correlation (no kernel flip); taps are applied
    # in natural order over the zero-padded input.
    for wv, wh, o_ref in ((wv2, wh2, o2_ref), (wv4, wh4, o4_ref)):
        v = wv[0] * padv[:, 0:H, :]
        for ky in range(1, 5):
            v = v + wv[ky] * padv[:, ky:ky + H, :]
        # Horizontal halo for the second pass.
        padh[:, :, 2:2 + W] = v
        acc = wh[0] * padh[:, :, 0:W]
        for kx in range(1, 5):
            acc = acc + wh[kx] * padh[:, :, kx:kx + W]
        o_ref[...] = acc.astype(o_ref.dtype)


def fused_normalize_blur(image2, k2_5x5, k4_5x5):
    """Returns (normalized image2, blur with weightt2, blur with weightt4).

    Single HBM read of image2; no HBM-side padding; separable 5+5 tap stencil;
    all C channels processed per grid step; batch axis marked parallel."""
    B, C, H, W = image2.shape
    kv2, kh2 = _separable_taps(k2_5x5)
    kv4, kh4 = _separable_taps(k4_5x5)
    kern = functools.partial(
        _fused_norm_blur_kernel,
        wv2=tuple(map(float, kv2)), wh2=tuple(map(float, kh2)),
        wv4=tuple(map(float, kv4)), wh4=tuple(map(float, kh4)))
    spec = pl.BlockSpec((None, C, H, W), lambda b: (b, 0, 0, 0))
    out_sds = (jax.ShapeDtypeStruct((B, C, H, W), image2.dtype),) * 3
    norm2, blur2, blur4 = pl.pallas_call(
        kern,
        out_shape=out_sds,
        grid=(B,),
        in_specs=[spec],
        out_specs=(spec, spec, spec),
        scratch_shapes=[pltpu.VMEM((C, H + 4, W), jnp.float32),
                        pltpu.VMEM((C, H, W + 4), jnp.float32)],
        compiler_params=pltpu.CompilerParams(
            dimension_semantics=("parallel",)),
    )(image2)
    return norm2, blur2, blur4


# ----------------------------------------------------------------------------
# Kernel 3: gcorr — tiled, transpose-free, bf16-fed MXU contraction
# ----------------------------------------------------------------------------
def _gcorr_kernel(f1_ref, f2_ref, o_ref, *, inv_sqrt_d):
    # f1_ref: (TM, D) with contraction dim last, f2_ref: (D, TN).
    a = f1_ref[...].astype(jnp.bfloat16)
    b = f2_ref[...].astype(jnp.bfloat16)
    c = jnp.dot(a, b, preferred_element_type=jnp.float32)
    o_ref[...] = (c * inv_sqrt_d).astype(o_ref.dtype)


def gcorr(fmap1, fmap2, *, target_tm=256, target_tn=512):
    """TTC.gcorr: matmul(fmap1.view(B,D,L1).T, fmap2.view(B,D,L2)) / sqrt(D).

    Output is tiled (B, L1/TM, L2/TN) so the full L1xL2 volume never has to
    sit in VMEM; the D reduction stays inside the block (D is small)."""
    b1, d1, h1, w1 = fmap1.shape
    b2, d2, h2, w2 = fmap2.shape
    L1, L2 = h1 * w1, h2 * w2
    # Pre-permute LHS so the contraction dim (D) is last: no in-kernel
    # XLU transpose in front of the MXU.
    f1 = jnp.transpose(fmap1.reshape(b1, d1, L1), (0, 2, 1))   # (B, L1, D)
    f2 = fmap2.reshape(b2, d2, L2)                              # (B, D, L2)
    TM = _pick_tile(L1, target_tm, 8)
    TN = _pick_tile(L2, target_tn, 128)
    inv_sqrt_d = 1.0 / float(np.sqrt(d1))
    kern = functools.partial(_gcorr_kernel, inv_sqrt_d=inv_sqrt_d)
    return pl.pallas_call(
        kern,
        out_shape=jax.ShapeDtypeStruct((b1, L1, L2), jnp.float32),
        grid=(b1, L1 // TM, L2 // TN),
        in_specs=[pl.BlockSpec((None, TM, d1), lambda b, i, j: (b, i, 0)),
                  pl.BlockSpec((None, d2, TN), lambda b, i, j: (b, 0, j))],
        out_specs=pl.BlockSpec((None, TM, TN), lambda b, i, j: (b, i, j)),
        compiler_params=pltpu.CompilerParams(
            dimension_semantics=("parallel", "parallel", "parallel"),
            vmem_limit_bytes=48 * 1024 * 1024),
        cost_estimate=pl.CostEstimate(
            flops=2 * b1 * L1 * L2 * d1,
            transcendentals=0,
            bytes_accessed=4 * b1 * (L1 * d1 + d1 * L2 + L1 * L2)),
    )(f1, f2)


# ----------------------------------------------------------------------------
# Plain-JAX glue (trivial elementwise / gather ops; XLA fuses these for free)
# ----------------------------------------------------------------------------
def grid2exp(exp):
    # Dropped the Pallas kernel per review: a (3,1,10,10) single-step
    # pallas_call is pure launch + DMA overhead.
    return jnp.clip(exp, 0.0, 3.0) * 0.25 + 0.5


def nearest_resize_nchw(x, out_h, out_w):
    """Matches F.interpolate(x, [out_h, out_w]) (default mode='nearest')."""
    in_h, in_w = x.shape[-2], x.shape[-1]
    rows = (jnp.arange(out_h) * in_h) // out_h
    cols = (jnp.arange(out_w) * in_w) // out_w
    return x[:, :, rows, :][:, :, :, cols]


def ttc_forward_features(image1, image2, fmap1, fmap2, expu, kernels, deltas):
    """Implements the well-defined compute of TTC.forward: normalization,
    Gaussian pyramid (fused blur + nearest resize), gcorr, grid2exp."""
    B, C, H, W = image1.shape
    img1 = normalize_image(image1)

    # Single fused pass over image2: normalize + both pyramid blurs.
    img2, blur_k2, blur_k4 = fused_normalize_blur(
        image2, kernels["k2"], kernels["k4"])

    d2, d4 = deltas["d2"], deltas["d4"]
    # image21 = conv2d(image2, weightt4, padding=2, groups=3); resize to 0.5
    image21 = nearest_resize_nchw(blur_k4, int(H * d4), int(W * d4))
    # image23 = conv2d(image2, weightt2, padding=2, groups=3); resize to 0.75
    image23 = nearest_resize_nchw(blur_k2, int(H * d2), int(W * d2))
    # image26 = F.interpolate(image2, [h*1.25, w*1.25])
    image26 = nearest_resize_nchw(img2, int(H * 1.25), int(W * 1.25))

    # TODO(synk): fnet/cnet (Basic/SmallEncoder), CorrpyBlockTTC, GNNs and the
    # pre/flow/mid/mask heads are undefined in the provided source; the
    # correlation volume below uses stand-in feature maps.
    corr = gcorr(fmap1, fmap2)

    exp_pred = grid2exp(expu)

    return img1, img2, blur_k2, blur_k4, image21, image23, image26, corr, exp_pred


# ----------------------------------------------------------------------------
# Main
# ----------------------------------------------------------------------------
if __name__ == "__main__":
    key = jax.random.PRNGKey(0)
    k_im1, k_im2, k_f1, k_f2 = jax.random.split(key, 4)

    B, C, H, W = 2, 3, 16, 16
    image1 = jax.random.uniform(k_im1, (B, C, H, W), jnp.float32, 0.0, 255.0)
    image2 = jax.random.uniform(k_im2, (B, C, H, W), jnp.float32, 0.0, 255.0)

    # Deterministic gaussian kernels exactly as in TTC.__init__ (weightt1..4)
    kernels = {
        "k1": gaussian2D2([5, 5], sigma=(2 ** 0.25, 2 ** 0.25)),
        "k2": gaussian2D2([5, 5], sigma=(2 ** 0.5, 2 ** 0.5)),
        "k3": gaussian2D2([5, 5], sigma=(2 ** 0.75, 2 ** 0.75)),
        "k4": gaussian2D2([5, 5], sigma=(2 ** 1.0, 2 ** 1.0)),
    }
    deltas = {"d1": 1.75 / 2, "d2": 1.5 / 2, "d3": 1.25 / 2, "d4": 1 / 2}

    # Stand-in feature maps for the (untranslatable) fnet outputs, used by gcorr.
    D, Hf, Wf = 32, 8, 8
    fmap1 = jax.random.normal(k_f1, (B, D, Hf, Wf), jnp.float32)
    fmap2 = jax.random.normal(k_f2, (B, D, Hf, Wf), jnp.float32)

    # expu = ones(sum(boxnum), 1, 10, 10) + 1   (take sum(boxnum) = 3)
    expu = jnp.ones((3, 1, 10, 10), jnp.float32) + 1.0

    outs = ttc_forward_features(image1, image2, fmap1, fmap2, expu, kernels, deltas)
    outs = jax.block_until_ready(outs)
    (img1, img2n, blur_k2, blur_k4, image21, image23, image26,
     corr, exp_pred) = outs

    # ------------------------- numpy sanity checks -------------------------
    img1_ref = 2.0 * (np.asarray(image1) / 255.0) - 1.0
    img2_ref = 2.0 * (np.asarray(image2) / 255.0) - 1.0
    assert np.allclose(np.asarray(img1), img1_ref, atol=1e-5)
    assert np.allclose(np.asarray(img2n), img2_ref, atol=1e-5)

    def conv5x5_ref(x, k):
        b, c, h, w = x.shape
        xp = np.pad(x, ((0, 0), (0, 0), (2, 2), (2, 2)))
        out = np.zeros_like(x)
        for ky in range(5):
            for kx in range(5):
                out += k[ky, kx] * xp[:, :, ky:ky + h, kx:kx + w]
        return out

    def nn_resize_ref(x, oh, ow):
        ih, iw = x.shape[-2], x.shape[-1]
        r = (np.arange(oh) * ih) // oh
        c = (np.arange(ow) * iw) // ow
        return x[:, :, r, :][:, :, :, c]

    blur2_ref = conv5x5_ref(img2_ref, kernels["k2"])
    blur4_ref = conv5x5_ref(img2_ref, kernels["k4"])
    assert np.allclose(np.asarray(blur_k2), blur2_ref, atol=1e-4)
    assert np.allclose(np.asarray(blur_k4), blur4_ref, atol=1e-4)

    im21_ref = nn_resize_ref(blur4_ref, int(H * deltas["d4"]), int(W * deltas["d4"]))
    im23_ref = nn_resize_ref(blur2_ref, int(H * deltas["d2"]), int(W * deltas["d2"]))
    assert np.allclose(np.asarray(image21), im21_ref, atol=1e-4)
    assert np.allclose(np.asarray(image23), im23_ref, atol=1e-4)

    f1 = np.asarray(fmap1).reshape(B, D, Hf * Wf)
    f2 = np.asarray(fmap2).reshape(B, D, Hf * Wf)
    corr_ref = np.matmul(np.transpose(f1, (0, 2, 1)), f2) / np.sqrt(D)
    # bf16 MXU feed (f32 accumulation) -> loose tolerance vs the f32 reference.
    assert np.allclose(np.asarray(corr), corr_ref, atol=5e-2, rtol=5e-2)

    exp_ref = np.clip(np.asarray(expu), 0.0, 3.0) * 0.25 + 0.5
    assert np.allclose(np.asarray(exp_pred), exp_ref, atol=1e-6)

    print("KERNEL_OK")
</pallas_src>

<mosaic_0001>
module attributes {stable_mosaic.version = 11 : i64} {
  func.func @_norm_kernel(%arg0: i32, %arg1: memref<3x512xf32, #tpu.memory_space<vmem>>, %arg2: memref<3x512xf32, #tpu.memory_space<vmem>>) attributes {dimension_semantics = [#tpu.dimension_semantics<parallel>], iteration_bounds = array<i64: 1>, scalar_prefetch = 0 : i64, scratch_operands = 0 : i64, tpu.core_type = #tpu.core_type<tc>, window_params = [{transform_indices = @transform_0, window_bounds = array<i64: 3, 512>}, {transform_indices = @transform_1, window_bounds = array<i64: 3, 512>}]} {
    %c0 = arith.constant 0 : index
    %c0_0 = arith.constant 0 : index
    %0 = vector.load %arg1[%c0, %c0_0] : memref<3x512xf32, #tpu.memory_space<vmem>>, vector<3x512xf32>
    %cst = arith.constant 0.00392156886 : f32
    %1 = vector.broadcast %cst : f32 to vector<3x512xf32>
    %2 = arith.mulf %0, %1 : vector<3x512xf32>
    %cst_1 = arith.constant 2.000000e+00 : f32
    %3 = vector.broadcast %cst_1 : f32 to vector<3x512xf32>
    %4 = arith.mulf %3, %2 : vector<3x512xf32>
    %cst_2 = arith.constant 1.000000e+00 : f32
    %5 = vector.broadcast %cst_2 : f32 to vector<3x512xf32>
    %6 = arith.subf %4, %5 : vector<3x512xf32>
    %c0_3 = arith.constant 0 : index
    %c0_4 = arith.constant 0 : index
    %7 = vector.load %arg2[%c0_3, %c0_4] : memref<3x512xf32, #tpu.memory_space<vmem>>, vector<3x512xf32>
    tpu.vector_store %arg2[%c0_3, %c0_4], %6 {strides = array<i32>} : memref<3x512xf32, #tpu.memory_space<vmem>>, vector<3x512xf32>,
    return
  }
  func.func @transform_0(%arg0: i32) -> (i32, i32) {
    %c0_i32 = arith.constant 0 : i32
    %c0_i32_0 = arith.constant 0 : i32
    return %arg0, %c0_i32 : i32, i32
  }
  func.func @transform_1(%arg0: i32) -> (i32, i32) {
    %c0_i32 = arith.constant 0 : i32
    %c0_i32_0 = arith.constant 0 : i32
    return %arg0, %c0_i32 : i32, i32
  }
}

</mosaic_0001>

<bundles_post_ra>
// kernel: tpu_custom_call.1
= control target key start
LH: loop header
LB: loop body
LE: loop exit
PB: predicated region body
PF: predicated region fallthrough
CT: control target
= control target key end

     0   :  { %6 = vsyncpa [#allocation3], 0  ;;  %s124_s0 = inlined_call_operand.hbm [shape: f32[3,512], index: 0, kind: input, shape index: {}]   ;;  %s125_s1 = inlined_call_operand.hbm [shape: f32[3,512], index: 1, kind: output, shape index: {}]  }
   0x1   :  { %7 = vsyncpa [#allocation4], 0  ;;  %s13_s8 = sshll.u32 %s124_s0, 4  ;;  %s106_s9 = smov [#allocation2]   ;;  %s14_s8 = int_to_ptr.hbm [resolvable:$true] %s13_s8 }
   0x2   :  { %s15_s10 = sshll.u32 %s106_s9, 4  ;;  %s16_s10 = int_to_ptr.vmem [resolvable:$true] %s15_s10 }
   0x3   :  { %18 = dma.hbm_to_vmem [thread:$0]  %s14_s8, 256, %s16_s10, [#allocation3]  }
   0x4   :  { %102 = dma.done.wait [#allocation3], 256  }
   0x5   :  { %103 = vsyncadd [#allocation3], 4294967040  ;;  %v23_v0 = vld [vmem:[#allocation2] sm:$0x77]  ;;  %v24_v1 = vld [vmem:[#allocation2 + $0x8] sm:$0x77] }
   0x6   :  { %v25_v2 = vmul.f32 0.003921569, %v23_v0  ;;  %v26_v3 = vmul.f32 0.003921569, %v24_v1  ;;  %s107_s11 = smov [#allocation5]   ;;  %s40_s15 = sshll.u32 %s125_s1, 4  ;;  %s41_s15 = int_to_ptr.hbm [resolvable:$true] %s40_s15 }
   0x7   :  { %s38_s12 = sshll.u32 %s107_s11, 4  ;;  %s39_s12 = int_to_ptr.vmem [resolvable:$true] %s38_s12 }
   0x8   :  { %v27_v4 = vmul.f32 2.0, %v25_v2  ;;  %v28_v5 = vmul.f32 2.0, %v26_v3 }
   0xa   :  { %v50_v6 = vadd.f32 -1.0, %v27_v4  ;;  %v51_v7 = vadd.f32 -1.0, %v28_v5 }
   0xc   :  { %31 = vst [vmem:[#allocation5] sm:$0x77] %v50_v6 }
   0xd   :  { %32 = vst [vmem:[#allocation5 + $0x8] sm:$0x77] %v51_v7 }
   0xe   :  { %43 = dma.vmem_to_hbm [thread:$0]  %s39_s12, 256, %s41_s15, [#allocation4]  }
   0xf   :  { %104 = dma.done.wait [#allocation4], 256  }
  0x10   :  { %105 = vsyncadd [#allocation4], 4294967040 }
  0x11   :  { %48 = vsyncpa [#allocation3], 1 }
  0x12   :  { %49 = vsyncpa [#allocation4], 1 }

</bundles_post_ra>
